<compile_context>
chip_gen: v7x
topology: tpu7x:2x2x1
jax: 0.10.0
libtpu: 0.0.40
codegen_flags: <defaults>
</compile_context>

<pallas_src>
import functools

import jax
import jax.numpy as jnp
from jax import lax
from jax.experimental import pallas as pl
from jax.experimental.pallas import tpu as pltpu


def _round_up(x, mult):
    return ((x + mult - 1) // mult) * mult


def _cosface_kernel(x_ref, w_ref, sx_ref, iw_ref, label_ref, o_ref, *, sm, tn):
    """One (tm, tn) output tile of  s * cosine - (s*m) * one_hot(label).

    x_ref:     (tm, Dp)  bf16   raw (un-normalized) input rows
    w_ref:     (tn, Dp)  bf16   raw (un-normalized) weight rows
    sx_ref:    (tm, 1)   f32    s / max(||x_row||, eps)
    iw_ref:    (1, tn)   f32    1 / max(||w_row||, eps)
    label_ref: (tm, 1)   i32
    o_ref:     (tm, tn)  f32
    """
    j = pl.program_id(1)

    # Raw dot product on the MXU: bf16 inputs, f32 accumulation.
    dot = lax.dot_general(
        x_ref[...], w_ref[...],
        dimension_numbers=(((1,), (1,)), ((), ())),
        preferred_element_type=jnp.float32,
    )

    # Normalization + s folded into a rank-1 scaling of the output tile:
    #   s * cosine = dot * (s / ||x||) * (1 / ||w||)
    scaled = dot * sx_ref[...] * iw_ref[...]

    # Margin only at the label column (iota offset by the class-tile index).
    cols = j * tn + lax.broadcasted_iota(jnp.int32, o_ref.shape, 1)
    mask = cols == label_ref[...]
    o_ref[...] = jnp.where(mask, scaled - sm, scaled)


def cosface_forward(x, weight, label, *, s=64.0, m=-0.03, tm=None, tn=None):
    """CosFace forward. x: (B, D) f32, weight: (N, D) f32, label: (B,) int."""
    B, D = x.shape
    N, D2 = weight.shape
    assert D == D2
    eps = 1e-12

    x = x.astype(jnp.float32)
    weight = weight.astype(jnp.float32)

    # ---- tile selection (generation-aware) --------------------------------
    try:
        vmem_cap = int(pltpu.get_tpu_info().vmem_capacity_bytes)
    except Exception:  # conservative fallback (v7x-sized VMEM)
        vmem_cap = 64 * 1024 * 1024
    tn_cap = 2048 if vmem_cap <= 64 * 1024 * 1024 else 4096

    if tm is None:
        tm = min(_round_up(B, 16), 256)
    if tn is None:
        tn = min(_round_up(N, 128), tn_cap)
    assert tm % 16 == 0 and tn % 128 == 0, "tm must be mult of 16, tn of 128"

    Bp = _round_up(B, tm)
    Np = _round_up(N, tn)
    Dp = _round_up(D, 128)

    # ---- pad + one-time tiny per-row inverse norms -------------------------
    xp = jnp.pad(x, ((0, Bp - B), (0, Dp - D)))
    wp = jnp.pad(weight, ((0, Np - N), (0, Dp - D)))
    lp = jnp.pad(label.reshape(-1).astype(jnp.int32), (0, Bp - B)).reshape(Bp, 1)

    sx = (s / jnp.maximum(jnp.linalg.norm(xp, axis=1, keepdims=True), eps)
          ).astype(jnp.float32)                       # (Bp, 1)
    iw = (1.0 / jnp.maximum(jnp.linalg.norm(wp, axis=1, keepdims=True), eps)
          ).astype(jnp.float32).T                     # (1, Np)

    xb = xp.astype(jnp.bfloat16)
    wb = wp.astype(jnp.bfloat16)

    grid = (Bp // tm, Np // tn)

    # Double-buffered VMEM estimate + explicit limit (stays under v7x 64 MiB).
    est = 2 * (tm * Dp * 2 + tn * Dp * 2 + tm * tn * 4 + (2 * tm + tn) * 4)
    vmem_limit = int(min(vmem_cap - 16 * 1024 * 1024,
                         max(32 * 1024 * 1024, 2 * est)))

    kernel = functools.partial(_cosface_kernel, sm=float(s) * float(m), tn=tn)

    out = pl.pallas_call(
        kernel,
        out_shape=jax.ShapeDtypeStruct((Bp, Np), jnp.float32),
        grid_spec=pltpu.PrefetchScalarGridSpec(
            num_scalar_prefetch=0,
            grid=grid,
            in_specs=[
                pl.BlockSpec((tm, Dp), lambda i, j: (i, 0)),   # x tile
                pl.BlockSpec((tn, Dp), lambda i, j: (j, 0)),   # W tile
                pl.BlockSpec((tm, 1), lambda i, j: (i, 0)),    # s/||x||
                pl.BlockSpec((1, tn), lambda i, j: (0, j)),    # 1/||w||
                pl.BlockSpec((tm, 1), lambda i, j: (i, 0)),    # labels
            ],
            out_specs=pl.BlockSpec((tm, tn), lambda i, j: (i, j)),
        ),
        compiler_params=pltpu.CompilerParams(
            dimension_semantics=("parallel", "parallel"),
            vmem_limit_bytes=vmem_limit,
        ),
    )(xb, wb, sx, iw, lp)

    return out[:B, :N]


if __name__ == "__main__":
    B, D, N = 24, 96, 500  # batch, in_features, out_features (small demo)
    s, m = 64.0, -0.03

    key = jax.random.PRNGKey(0)
    kx, kw, kl = jax.random.split(key, 3)
    x = jax.random.normal(kx, (B, D), jnp.float32)
    bound = float((6.0 / (D + N)) ** 0.5)  # xavier_uniform for (N, D) weight
    weight = jax.random.uniform(kw, (N, D), jnp.float32, -bound, bound)
    label = jax.random.randint(kl, (B,), 0, N, jnp.int32)

    # Pure-JAX reference (PyTorch CosFace.forward, device_id=None path).
    xn = x / jnp.maximum(jnp.linalg.norm(x, axis=1, keepdims=True), 1e-12)
    wn = weight / jnp.maximum(jnp.linalg.norm(weight, axis=1, keepdims=True), 1e-12)
    cosine = xn @ wn.T
    one_hot = jax.nn.one_hot(label, N, dtype=jnp.float32)
    ref = s * (one_hot * (cosine - m) + (1.0 - one_hot) * cosine)

    # (1) small explicit tiles -> multi-tile grid (exercises B/N/D padding
    #     and the iota column offset), (2) auto-selected tiles.
    out_tiled = jax.block_until_ready(
        cosface_forward(x, weight, label, s=s, m=m, tm=16, tn=128))
    out_auto = jax.block_until_ready(
        cosface_forward(x, weight, label, s=s, m=m))

    for out in (out_tiled, out_auto):
        assert out.shape == (B, N)
        err = float(jnp.max(jnp.abs(out - ref)))
        # bf16 MXU inputs + s=64 output scale -> expect O(1e-2) abs error.
        assert err < 0.35, f"max abs error {err}"

    print("KERNEL_OK")
</pallas_src>

<mosaic_0001>
module attributes {stable_mosaic.version = 11 : i64} {
  func.func @_cosface_kernel(%arg0: i32, %arg1: i32, %arg2: memref<16x128xbf16, #tpu.memory_space<vmem>>, %arg3: memref<128x128xbf16, #tpu.memory_space<vmem>>, %arg4: memref<16x1xf32, #tpu.memory_space<vmem>>, %arg5: memref<1x128xf32, #tpu.memory_space<vmem>>, %arg6: memref<16x1xi32, #tpu.memory_space<vmem>>, %arg7: memref<16x128xf32, #tpu.memory_space<vmem>>) attributes {dimension_semantics = [#tpu.dimension_semantics<parallel>, #tpu.dimension_semantics<parallel>], iteration_bounds = array<i64: 2, 4>, scalar_prefetch = 0 : i64, scratch_operands = 0 : i64, tpu.core_type = #tpu.core_type<tc>, window_params = [{transform_indices = @transform_0, window_bounds = array<i64: 16, 128>}, {transform_indices = @transform_1, window_bounds = array<i64: 128, 128>}, {transform_indices = @transform_2, window_bounds = array<i64: 16, 1>}, {transform_indices = @transform_3, window_bounds = array<i64: 1, 128>}, {transform_indices = @transform_4, window_bounds = array<i64: 16, 1>}, {transform_indices = @transform_5, window_bounds = array<i64: 16, 128>}]} {
    %c0 = arith.constant 0 : index
    %c0_0 = arith.constant 0 : index
    %0 = vector.load %arg2[%c0, %c0_0] : memref<16x128xbf16, #tpu.memory_space<vmem>>, vector<16x128xbf16>
    %c0_1 = arith.constant 0 : index
    %c0_2 = arith.constant 0 : index
    %1 = vector.load %arg3[%c0_1, %c0_2] : memref<128x128xbf16, #tpu.memory_space<vmem>>, vector<128x128xbf16>
    %cst = arith.constant dense<0.000000e+00> : vector<16x128xf32>
    %2 = tpu.matmul %0, %1, %cst {dimension_numbers = #tpu.dot_dimension_numbers<[1], [1], [0], [0], [0, 0, 1, 0], [], []>} : vector<16x128xbf16>, vector<128x128xbf16>, vector<16x128xf32> -> vector<16x128xf32>
    %c0_3 = arith.constant 0 : index
    %c0_4 = arith.constant 0 : index
    %3 = vector.load %arg4[%c0_3, %c0_4] : memref<16x1xf32, #tpu.memory_space<vmem>>, vector<16x1xf32>
    %4 = vector.broadcast %3 : vector<16x1xf32> to vector<16x128xf32>
    %5 = arith.mulf %2, %4 : vector<16x128xf32>
    %c0_5 = arith.constant 0 : index
    %c0_6 = arith.constant 0 : index
    %6 = vector.load %arg5[%c0_5, %c0_6] : memref<1x128xf32, #tpu.memory_space<vmem>>, vector<1x128xf32>
    %7 = vector.broadcast %6 : vector<1x128xf32> to vector<16x128xf32>
    %8 = arith.mulf %5, %7 : vector<16x128xf32>
    %c128_i32 = arith.constant 128 : i32
    %9 = arith.muli %arg1, %c128_i32 : i32
    %10 = tpu.iota {dimensions = array<i32: 1>} : vector<16x128xi32>
    %11 = vector.broadcast %9 : i32 to vector<16x128xi32>
    %12 = arith.addi %11, %10 : vector<16x128xi32>
    %c0_7 = arith.constant 0 : index
    %c0_8 = arith.constant 0 : index
    %13 = vector.load %arg6[%c0_7, %c0_8] : memref<16x1xi32, #tpu.memory_space<vmem>>, vector<16x1xi32>
    %14 = vector.broadcast %13 : vector<16x1xi32> to vector<16x128xi32>
    %15 = arith.cmpi eq, %12, %14 : vector<16x128xi32>
    %cst_9 = arith.constant -1.920000e+00 : f32
    %16 = vector.broadcast %cst_9 : f32 to vector<16x128xf32>
    %17 = arith.subf %8, %16 : vector<16x128xf32>
    %18 = arith.select %15, %17, %8 : vector<16x128xi1>, vector<16x128xf32>
    %c0_10 = arith.constant 0 : index
    %c0_11 = arith.constant 0 : index
    %19 = vector.load %arg7[%c0_10, %c0_11] : memref<16x128xf32, #tpu.memory_space<vmem>>, vector<16x128xf32>
    tpu.vector_store %arg7[%c0_10, %c0_11], %18 {strides = array<i32>} : memref<16x128xf32, #tpu.memory_space<vmem>>, vector<16x128xf32>,
    return
  }
  func.func @transform_0(%arg0: i32, %arg1: i32) -> (i32, i32) {
    %c0_i32 = arith.constant 0 : i32
    %c0_i32_0 = arith.constant 0 : i32
    return %arg0, %c0_i32 : i32, i32
  }
  func.func @transform_1(%arg0: i32, %arg1: i32) -> (i32, i32) {
    %c0_i32 = arith.constant 0 : i32
    %c0_i32_0 = arith.constant 0 : i32
    return %arg1, %c0_i32 : i32, i32
  }
  func.func @transform_2(%arg0: i32, %arg1: i32) -> (i32, i32) {
    %c0_i32 = arith.constant 0 : i32
    %c0_i32_0 = arith.constant 0 : i32
    return %arg0, %c0_i32 : i32, i32
  }
  func.func @transform_3(%arg0: i32, %arg1: i32) -> (i32, i32) {
    %c0_i32 = arith.constant 0 : i32
    %c0_i32_0 = arith.constant 0 : i32
    return %c0_i32, %arg1 : i32, i32
  }
  func.func @transform_4(%arg0: i32, %arg1: i32) -> (i32, i32) {
    %c0_i32 = arith.constant 0 : i32
    %c0_i32_0 = arith.constant 0 : i32
    return %arg0, %c0_i32 : i32, i32
  }
  func.func @transform_5(%arg0: i32, %arg1: i32) -> (i32, i32) {
    %c0_i32 = arith.constant 0 : i32
    return %arg0, %arg1 : i32, i32
  }
}

</mosaic_0001>

<bundles_post_ra>
// kernel: tpu_custom_call.1
= control target key start
LH: loop header
LB: loop body
LE: loop exit
PB: predicated region body
PF: predicated region fallthrough
CT: control target
= control target key end

     0   :  { %s1277_s0 = inlined_call_operand.vmem [shape: bf16[32,128], index: 0, kind: input, shape index: {}]   ;;  %s1278_s1 = inlined_call_operand.hbm [shape: bf16[512,128], index: 1, kind: input, shape index: {}]   ;;  %s1279_s2 = inlined_call_operand.vmem [shape: f32[32,1], index: 2, kind: input, shape index: {}]   ;;  %s1280_s3 = inlined_call_operand.vmem [shape: f32[1,512], index: 3, kind: input, shape index: {}]   ;;  %s1281_s4 = inlined_call_operand.vmem [shape: s32[32,1], index: 4, kind: input, shape index: {}]   ;;  %s1282_s5 = inlined_call_operand.hbm [shape: f32[32,512], index: 5, kind: output, shape index: {}]  }
   0x1   :  { %1287 = sst [smem:[#allocation11_spill]] %s1278_s1 }
   0x2   :  { %10 = vsyncpa [#allocation3], 0 }
   0x3   :  { %12 = vsyncpa [#allocation3 + $0x1], 0 }
   0x4   :  { %13 = vsyncpa [#allocation4], 0 }
   0x5   :  { %15 = vsyncpa [#allocation4 + $0x1], 0  ;;  %s1025_s18 = smov 0   ;;  %s1027_s19 = smov 0  }
   0x6   :  { %s1029_s20 = smov 0   ;;  %s1031_s21 = smov 0  }
   0x7   :  { %s1033_s22 = smov 0   ;;  %s1035_s23 = smov 0  }
   0x8   :  { %s1037_s24 = smov 0   ;;  %s1039_s25 = smov 0  }
   0x9   :  { %s1041_s26 = smov 0   ;;  %s1043_s27 = smov 0  }
   0xa   :  { %s1045_s28 = smov 0  }
   0xb LB: > { %1288 = sst [smem:[#allocation8_spill]] %s979_s27  ;;  %s644_s29 = sadd.s32 4294967295, %s983_s28   ;;  %s983_s28 = sphi %s1045_s28, %s21_s28   ;;  %s979_s27 = sphi %s1043_s27, %s1302_s27   ;;  %s975_s26 = sphi %s1041_s26, %s1310_s26   ;;  %s971_s25 = sphi %s1039_s25, %s1300_s25   ;;  %s967_s24 = sphi %s1037_s24, %s1309_s24   ;;  %s963_s23 = sphi %s1035_s23, %s1308_s23   ;;  %s959_s22 = sphi %s1033_s22, %s1307_s22   ;;  %s955_s21 = sphi %s1031_s21, %s1306_s21   ;;  %s951_s20 = sphi %s1029_s20, %s1305_s20   ;;  %s947_s19 = sphi %s1027_s19, %s1304_s19   ;;  %s943_s18 = sphi %s1025_s18, %s1303_s18  }
   0xc   : > { %s645_s30 = sadd.s32 4294967294, %s983_s28   ;;  %s30_s6 = sadd.s32 1, %s975_s26 }
   0xd   : > { %s33_s7 = sadd.s32 1, %s979_s27  ;;  %p31_p0 = scmp.ge.s32.totalorder %s30_s6, 4 }
   0xe   : > { %s66_s8 = sadd.s32 1, %s963_s23  ;;  %p73_p1 = scmp.ne.s32.totalorder %s963_s23, %s959_s22 }
   0xf   : > { %p74_p2 = scmp.eq.s32.totalorder %s983_s28, 0  ;;  %s1312_s6 = smov (%p31_p0, %s30_s6), 0 }
  0x10   : > { %1289 = sst [smem:[#allocation9_spill]] %s1312_s6  ;;  %s1314_s7 = smov (!%p31_p0, %s33_s7), %s979_s27 }
  0x11   : > { %s63_s9 = ssub.s32 %s975_s26, %s1312_s6  ;;  %p1091_p3 = por %p74_p2, %p73_p1 }
  0x12   : > { %p35_p4 = scmp.ge.s32.totalorder %s1314_s7, 2  ;;  %p64_p5 = scmp.eq.s32.totalorder %s63_s9, 0 }
  0x13   : > { %p79_p6 = scmp.ne.s32.totalorder %s959_s22, %s955_s21  ;;  %p80_p7 = scmp.eq.s32.totalorder %s644_s29, 0 }
  0x14   : > { %s1316_s7 = smov (%p35_p4, %s1314_s7), 0  ;;  %s172_s15 = sadd.s32 1, %s951_s20 }
  0x15   : > { %1291 = sst [smem:[#allocation10_spill]] %s1316_s7  ;;  %p1101_p8 = por %p80_p7, %p79_p6 }
  0x16   : > { %s1099_s11 = scalar_select %p64_p5, %s963_s23, %s66_s8  }
  0x17   : > { %s167_s13 = ssub.s32 %s979_s27, %s1316_s7  ;;  %p182_p10 = scmp.ne.s32.totalorder %s951_s20, %s947_s19 }
  0x18   : > { %s169_s14 = sor.u32 %s167_s13, %s63_s9  ;;  %p183_p11 = scmp.eq.s32.totalorder %s644_s29, 7 }
  0x19   : > { %p170_p9 = scmp.eq.s32.totalorder %s169_s14, 0  ;;  %p188_p12 = scmp.ne.s32.totalorder %s947_s19, %s943_s18 }
  0x1a   : > { %p1115_p13 = por %p183_p11, %p182_p10  ;;  %p189_p0 = scmp.eq.s32.totalorder %s645_s30, 7 }
  0x1b   : > { %s1113_s16 = scalar_select %p170_p9, %s951_s20, %s172_s15  }
  0x1c   : > { %s1293_s17 = scalar_select %p1115_p13, 1, 0 }
  0x1d   : > { %p722_p1 = scmp.lt.s32.totalorder %s983_s28, 8  ;;  %p1120_p2 = por %p189_p0, %p188_p12 }
  0x1e   : > { %s218_s8 = sand.u32 1, %s963_s23   ;;  %s679_s13 = sshll.u32 %s975_s26, 10 }
  0x1f   : > { %s1294_s21 = scalar_select %p1120_p2, 1, 0 }
  0x20   : > { %s648_s9 = sshll.u32 %s218_s8, 6  ;;  %s1295_s1 = sld [smem:[#allocation11_spill]] }
  0x21   : > { %s222_s15 = scalar_lea.vmem [#allocation2], %s648_s9  ;;  %p1135_p4 = pnand %p722_p1, %p1091_p3 }
  0x22   : > { %s229_s6 = sshll.u32 %s222_s15, 4  ;;  %s1140_s27 = scalar_lea.sflag [#allocation3], %s218_s8  ;;  %s1131_s6 = int_to_ptr.vmem [resolvable:$true] %s229_s6 }
  0x23   : > { %p833_p7 = pneg %p1135_p4 }
  0x26   : > { %s1129_s29 = scalar_lea.hbm %s1295_s1, %s679_s13  ;;  %s836_s10 = scalar_lea.hbm %s1295_s1, 4096 }
  0x27   : > { %s831_s7 = scalar_lea.hbm %s1129_s29, 1024  ;;  %p837_p3 = scmp.lt.u32.totalorder %s1129_s29, %s1295_s1 }
  0x28   : > { %p832_p6 = scmp.ne.s32.totalorder %s1129_s29, %s831_s7  ;;  %p838_p11 = scmp.lt.u32.totalorder %s836_s10, %s831_s7 }
  0x29   : > { %p840_p0 = scmp.lt.u32.totalorder %s831_s7, %s1129_s29 }
  0x2a   : > { %p834_p9 = pnand %p833_p7, %p832_p6  ;;  %p839_p12 = por %p838_p11, %p837_p3 }
  0x2c   : > { %p835_p10 = pneg %p834_p9  ;;  %p841_p1 = por %p840_p0, %p839_p12 }
  0x2e   : > { %p842_p5 = pnand %p841_p1, %p835_p10 }
  0x30   : > { %845 = shalt.err (!%p842_p5)
}
  0x31   : > { %s846_s8 = scalar_lea.vmem %s1131_s6, 1024  ;;  %s985_s9 = smov [#allocation2]  }
  0x32   : > { %p847_p6 = scmp.ne.s32.totalorder %s1131_s6, %s846_s8  ;;  %s851_s13 = sshll.u32 %s985_s9, 4  ;;  %s852_s13 = int_to_ptr.vmem [resolvable:$false] %s851_s13 }
  0x33   : > { %s853_s14 = scalar_lea.vmem %s852_s13, 2048  ;;  %p854_p13 = scmp.lt.s32.totalorder %s1131_s6, %s852_s13 }
  0x34   : > { %p849_p9 = pnand %p847_p6, %p833_p7  ;;  %p855_p3 = scmp.lt.s32.totalorder %s853_s14, %s846_s8 }
  0x36   : > { %p850_p2 = pneg %p849_p9  ;;  %p856_p11 = por %p855_p3, %p854_p13 }
  0x38   : > { %p857_p12 = pnand %p856_p11, %p850_p2 }
  0x3a   : > { %860 = shalt.err (!%p857_p12)
}
  0x3b   : > { %s986_s7 = smov 64   ;;  %s987_s10 = smov 4  }
  0x3c   : > { %717 = dma.hbm_to_vmem [thread:$0]  (!%p1135_p4), %s1129_s29, 1024, %s1131_s6, %s1140_s27, %s986_s7, %s986_s7, %s987_s10  }
  0x3d   : > { %p261_p5 = scmp.lt.s32.totalorder %s983_s28, 9  ;;  %p1297_p7 = scmp.ge.s32.totalorder %s983_s28, 1 }
  0x3f   : > { %p262_p10 = pnand %p1297_p7, %p261_p5 }
  0x40   : > { %s267_s15 = sand.u32 (!%p262_p10), 1, %s959_s22  }
  0x41   : > { %265 = sbr.rel (%p262_p10) target bundleno = 376 (0x178), region = 40  ;;  %s652_s8 = sshll.u32 (!%p262_p10), %s267_s15, 6 }
  0x42   : > { %s268_s9 = scalar_lea.sflag (!%p262_p10), [#allocation3], %s267_s15  ;;  %s1172_s13 = scalar_lea.vmem (!%p262_p10), [#allocation2], %s652_s8 }
  0x48   : > { %934 = dma.done.wait (%p1101_p8), %s268_s9, 1024  }
  0x49   : > { %936 = vsyncadd (%p1101_p8), %s268_s9, 4294966272  ;;  %s654_s27 = sshll.u32 %s971_s25, 1  ;;  %v988_v0 = vmov 0.0   ;;  %vm989_vm0 = vmmov 0   ;;  %v990_v1 = vmov 0   ;;  %v822_v2 = vld [vmem:[%s1172_s13] sm:$0xff]   ;;  %v477_v15 = vlaneseq }
  0x4a   : > { %690 = vmatprep.subr.bf16.mxu0 %v988_v0  ;;  %706 = vmatprep.mubr.msk.bf16.mxu0 %vm989_vm0, %v988_v0  ;;  %p317_p13 = scmp.lt.s32.totalorder %s654_s27, 3  ;;  %v823_v3 = vld [vmem:[%s1172_s13 + $0x8] sm:$0xff]   ;;  %v824_v8 = vld [vmem:[%s1172_s13 + $0x10] sm:$0xff]   ;;  %v825_v9 = vld [vmem:[%s1172_s13 + $0x18] sm:$0xff]   ;;  %p329_p8 = scmp.lt.s32.totalorder %s967_s24, 3 }
  0x4b   : > { %820 = vset.pattern.permute.xlu0 %v990_v1  ;;  %821 = vset.pattern.permute.xlu1 %v990_v1  ;;  %v826_v10 = vld [vmem:[%s1172_s13 + $0x20] sm:$0xff]   ;;  %v827_v11 = vld [vmem:[%s1172_s13 + $0x28] sm:$0xff]   ;;  %v828_v12 = vld [vmem:[%s1172_s13 + $0x30] sm:$0xff]   ;;  %v478_v17 = vand.u32 127, %v477_v15  ;;  %s680_s10 = sshll.u32 %s971_s25, 3  ;;  %p1298_p4 = scmp.ne.s32.totalorder %s1293_s17, 0 }
  0x4c   : > { %s1318_s27 = smov (!%p317_p13, %s654_s27), 3  ;;  %691 = vmatpush3.bf16.xpose.msra.mxu0 %v822_v2  ;;  %v829_v13 = vld [vmem:[%s1172_s13 + $0x38] sm:$0xff]   ;;  %s991_s29 = smov [#allocation5]  }
  0x4d   : > { %692 = vmatprep.subr.bf16.mxu0 %v988_v0  ;;  %s657_s6 = sshll.u32 %s1318_s27, 3  ;;  %s655_s12 = sshll.u32 %s1318_s27, 2 }
  0x4e   : > { %s327_s14 = scalar_lea.vmem %s1279_s2, %s657_s6  ;;  %s336_s15 = scalar_lea.vmem %s1281_s4, %s657_s6 }
  0x4f   : > { %s320_s1 = scalar_lea.vmem %s1277_s0, %s655_s12  ;;  %v453_v4 = vld [vmem:[%s327_s14] sm:$0xff]  ;;  %v454_v6 = vld [vmem:[%s327_s14 + $0x8] sm:$0xff]  ;;  %s313_s6 = sand.u32 1, %s947_s19  }
  0x50   : > { %v481_v5 = vld [vmem:[%s336_s15] sm:$0xff]  ;;  %457 = vperm.xlu0 %820, %v453_v4   ;;  %v482_v7 = vld [vmem:[%s336_s15 + $0x8] sm:$0xff]  ;;  %s330_s27 = scalar_select %p329_p8, %s967_s24, 3 }
  0x51   : > { %484 = vperm.xlu1 %821, %v481_v5   ;;  %v830_v14 = vld [vmem:[%s320_s1] sm:$0xff]   ;;  %s670_s12 = sshll.u32 %s967_s24, 7  ;;  %s653_s7 = sshll.u32 %s313_s6, 4 }
  0x52   : > { %s331_s14 = scalar_lea.vmem %s1280_s3, %s330_s27  ;;  %v479_v18 = vstv %s670_s12  ;;  %s510_s1 = sadd.s32 %s967_s24, %s680_s10 }
  0x53   : > { %v669_v21 = vld [vmem:[%s331_s14] ss:$0 sm:$0xff]  ;;  %v480_v25 = vadd.s32 %v479_v18, %v478_v17  ;;  %s315_s13 = scalar_lea.vmem [#allocation5], %s653_s7  ;;  %s676_s8 = sshll.u32 %s510_s1, 7 }
  0x54   : > { %693 = vmatpush3.bf16.xpose.msra.mxu0 %v823_v3  ;;  %462 = vperm.xlu0 %820, %v454_v6   ;;  %s513_s15 = sshll.u32 %s315_s13, 4  ;;  %s1212_s9 = scalar_lea.hbm %s1282_s5, %s676_s8  ;;  %s1207_s15 = int_to_ptr.vmem [resolvable:$true] %s513_s15 }
  0x55   : > { %694 = vmatprep.subr.bf16.mxu0 %v988_v0  ;;  %487 = vperm.xlu1 %821, %v482_v7   ;;  %s1216_s27 = scalar_lea.sflag [#allocation4], %s313_s6  ;;  %s861_s12 = scalar_lea.vmem %s1207_s15, 256 }
  0x56   : > { %p862_p2 = scmp.ne.s32.totalorder %s1207_s15, %s861_s12  ;;  %s865_s30 = sshll.u32 %s991_s29, 4  ;;  %s866_s30 = int_to_ptr.vmem [resolvable:$false] %s865_s30 }
  0x57   : > { %s867_s14 = scalar_lea.vmem %s866_s30, 512  ;;  %p868_p6 = scmp.lt.s32.totalorder %s1207_s15, %s866_s30 }
  0x58   : > { %p863_p0 = pnand %p862_p2, %p1298_p4  ;;  %p869_p9 = scmp.lt.s32.totalorder %s867_s14, %s861_s12 }
  0x5a   : > { %p864_p1 = pneg %p863_p0  ;;  %p870_p3 = por %p869_p9, %p868_p6 }
  0x5c   : > { %695 = vmatpush3.bf16.xpose.msra.mxu0 %v824_v8  ;;  %p871_p11 = pnand %p870_p3, %p864_p1 }
  0x5d   : > { %696 = vmatprep.subr.bf16.mxu0 %v988_v0 }
  0x64   : > { %697 = vmatpush3.bf16.xpose.msra.mxu0 %v825_v9 }
  0x65   : > { %698 = vmatprep.subr.bf16.mxu0 %v988_v0 }
  0x6c   : > { %699 = vmatpush3.bf16.xpose.msra.mxu0 %v826_v10 }
  0x6d   : > { %700 = vmatprep.subr.bf16.mxu0 %v988_v0 }
  0x74   : > { %701 = vmatpush3.bf16.xpose.msra.mxu0 %v827_v11 }
  0x75   : > { %702 = vmatprep.subr.bf16.mxu0 %v988_v0 }
  0x7c   : > { %703 = vmatpush3.bf16.xpose.msra.mxu0 %v828_v12 }
  0x7d   : > { %704 = vmatprep.subr.bf16.mxu0 %v988_v0 }
  0x84   : > { %705 = vmatpush3.bf16.xpose.msra.mxu0 %v829_v13 }
  0x8b   : > { %707 = vmatmul.mubr.bf16.vlgmr.msra.gmra.mrb[0].mxu0 %v830_v14 }
  0xcf   : > { %v458_v16 = vpop.permute.xlu0 %457 }
  0xd0   : > { %v485_v19 = vpop.permute.xlu1 %484 }
  0xd1   : > { %vm489_vm1 = vcmp.eq.s32.totalorder %v480_v25, %v485_v19 }
  0xd3   : > { %v463_v24 = vpop.permute.xlu0 %462 }
  0xd4   : > { %v488_v32 = vpop.permute.xlu1 %487 }
  0xd5   : > { %vm490_vm2 = vcmp.eq.s32.totalorder %v480_v25, %v488_v32 }
 0x15e   : > { %v446_v20 = vpop.f32.mrb[0].mxu0 }
 0x15f   : > { %v465_v22 = vmul.f32 %v458_v16, %v446_v20  ;;  %v708_v23 = vpop.f32.mrb[1].mxu0 }
 0x160   : > { %v449_v26 = vpop.f32.mrb[2].mxu0 }
 0x161   : > { %v474_v27 = vmul.f32 %v669_v21, %v465_v22  ;;  %v466_v28 = vmul.f32 %v463_v24, %v449_v26  ;;  %v709_v29 = vpop.f32.mrb[3].mxu0 }
 0x163   : > { %v671_v30 = vadd.f32 1.92, %v474_v27  ;;  %v475_v31 = vmul.f32 %v669_v21, %v466_v28 }
 0x165   : > { %v493_v33 = vsel %vm489_vm1, %v671_v30, %v474_v27  ;;  %v672_v34 = vadd.f32 1.92, %v475_v31 }
 0x166   : > { %495 = vst [vmem:[%s315_s13] sm:$0xff] %v493_v33 }
 0x167   : > { %v494_v35 = vsel %vm490_vm2, %v672_v34, %v475_v31 }
 0x168   : > { %496 = vst [vmem:[%s315_s13 + $0x8] sm:$0xff] %v494_v35 }
 0x169   : > { %874 = shalt.err (!%p871_p11)
}
 0x16a   : > { %s875_s6 = scalar_lea.hbm %s1212_s9, 256  ;;  %s879_s1 = scalar_lea.hbm %s1282_s5, 2048 }
 0x16b   : > { %p876_p12 = scmp.ne.s32.totalorder %s1212_s9, %s875_s6  ;;  %p880_p10 = scmp.lt.u32.totalorder %s1212_s9, %s1282_s5 }
 0x16c   : > { %p881_p13 = scmp.lt.u32.totalorder %s879_s1, %s875_s6  ;;  %p883_p2 = scmp.lt.u32.totalorder %s875_s6, %s1212_s9 }
 0x16d   : > { %p877_p5 = pnand %p876_p12, %p1298_p4 }
 0x16e   : > { %p882_p8 = por %p881_p13, %p880_p10 }
 0x16f   : > { %p878_p7 = pneg %p877_p5 }
 0x170   : > { %p884_p0 = por %p883_p2, %p882_p8 }
 0x172   : > { %p885_p1 = pnand %p884_p0, %p878_p7 }
 0x174   : > { %888 = shalt.err (!%p885_p1)
}
 0x175   : > { %s992_s24 = smov 128   ;;  %s993_s25 = smov 512  }
 0x176   : > { %s994_s12 = smov 8  }
 0x177   : > { %712 = dma.vmem_to_hbm [thread:$0]  (%p1298_p4), %s1207_s15, 256, %s1212_s9, %s1216_s27, %s992_s24, %s993_s25, %s994_s12  }
 0x178 PF: > { %p723_p6 = scmp.ge.s32.totalorder %s983_s28, 2  ;;  %s528_s29 = sand.u32 1, %s943_s18  }
 0x179   : > { %p1299_p9 = scmp.ne.s32.totalorder %s1294_s21, 0  ;;  %s529_s30 = scalar_lea.sflag [#allocation4], %s528_s29 }
 0x17b   : > { %p719_p3 = pnand %p723_p6, %p1299_p9 }
 0x17d   : > { %938 = dma.done.wait (!%p719_p3), %s529_s30, 256  }
 0x17e   : > { %940 = vsyncadd (!%p719_p3), %s529_s30, 4294967040  ;;  %s21_s28 = sadd.s32 1, %s983_s28   ;;  %s1300_s25 = sld [smem:[#allocation8_spill]] }
 0x17f   : > { %p18_p11 = scmp.ge.s32.totalorder %s21_s28, 10   ;;  %s1301_s17 = sld [smem:[#allocation9_spill]] }
 0x180   : > { %s1302_s27 = sld [smem:[#allocation10_spill]]  ;;  %s1303_s18 = smov %s947_s19 }
 0x181   : > { %s1304_s19 = smov %s951_s20  ;;  %s1305_s20 = smov %s1113_s16 }
 0x182   : > { %s1306_s21 = smov %s959_s22  ;;  %s1307_s22 = smov %s963_s23 }
 0x183   : > { %s1308_s23 = smov %s1099_s11  ;;  %s1309_s24 = smov %s975_s26 }
 0x184   :  { %20 = sbr.rel (!%p18_p11) target bundleno = 11 (0xb), region = 97 }
 0x185   : > { %s1310_s26 = smov %s1301_s17 }
 0x18b   :  { %534 = vsyncpa [#allocation3], 1 }
 0x18c   :  { %536 = vsyncpa [#allocation3 + $0x1], 1 }
 0x18d   :  { %537 = vsyncpa [#allocation4], 1 }
 0x18e   :  { %539 = vsyncpa [#allocation4 + $0x1], 1 }

</bundles_post_ra>
